<compile_context>
chip_gen: v5e
topology: v5e:2x2
jax: 0.10.0
libtpu: 0.0.40
codegen_flags: <defaults>
</compile_context>

<pallas_src>
import functools

import jax
import jax.numpy as jnp
from jax.experimental import pallas as pl
from jax.experimental.pallas import tpu as pltpu


def _round_up(n, m):
    return ((n + m - 1) // m) * m


def basic_block_1d_kernel(x_ref, w1_ref, b1_ref, w2_ref, b2_ref, o_ref):
    x = x_ref[...]
    # conv1 = Linear + ReLU
    h = jnp.dot(x, w1_ref[...], preferred_element_type=jnp.float32) + b1_ref[...]
    h = jnp.maximum(h, 0.0)
    # conv2 = Linear + ReLU
    h = jnp.dot(h, w2_ref[...], preferred_element_type=jnp.float32) + b2_ref[...]
    h = jnp.maximum(h, 0.0)
    # residual add (out += residual)
    o_ref[...] = (h + x).astype(o_ref.dtype)


@functools.partial(jax.jit, static_argnames=("max_block_rows",))
def basic_block_1d(x, w1, b1, w2, b2, max_block_rows=4096):
    """x: [B, C]; w1, w2: [C, C] (transposed, in x out); b1, b2: [C]."""
    B, C = x.shape

    # Pack P logical rows into one 128-lane packed row (P=4 for C=32).
    if C <= 128 and 128 % C == 0:
        P = 128 // C
    else:
        P = 1  # fall back to un-packed layout for odd channel counts
    L = P * C

    # Only pad B to a multiple of the packing factor (<= P-1 extra rows).
    B_pad = _round_up(B, P)
    x_in = jnp.pad(x, ((0, B_pad - B), (0, 0))) if B_pad != B else x
    R = B_pad // P                      # packed row count
    x_packed = x_in.reshape(R, L)       # contiguous reshape: no copy

    if P > 1:
        eye = jnp.eye(P, dtype=w1.dtype)
        w1_blk = jnp.kron(eye, w1)      # [L, L] block-diagonal
        w2_blk = jnp.kron(eye, w2)
        b1_blk = jnp.tile(b1, P).reshape(1, L)
        b2_blk = jnp.tile(b2, P).reshape(1, L)
    else:
        w1_blk, w2_blk = w1, w2
        b1_blk, b2_blk = b1.reshape(1, L), b2.reshape(1, L)

    # Tile selection: one fat block if it fits; otherwise an even number of
    # steps (balanced across v7x's 2 TensorCores), TB a multiple of 8.
    n_steps = pl.cdiv(R, max_block_rows)
    if n_steps > 1:
        n_steps = _round_up(n_steps, 2)
        TB = _round_up(pl.cdiv(R, n_steps), 8)
    else:
        TB = R  # full-array block: no (8,128) divisibility requirement
    grid = (pl.cdiv(R, TB),)            # partial trailing block allowed

    out_packed = pl.pallas_call(
        basic_block_1d_kernel,
        out_shape=jax.ShapeDtypeStruct((R, L), x.dtype),
        grid=grid,
        in_specs=[
            pl.BlockSpec((TB, L), lambda i: (i, 0)),   # x: row-tiled
            pl.BlockSpec((L, L), lambda i: (0, 0)),    # w1: VMEM-resident
            pl.BlockSpec((1, L), lambda i: (0, 0)),    # b1: VMEM-resident
            pl.BlockSpec((L, L), lambda i: (0, 0)),    # w2: VMEM-resident
            pl.BlockSpec((1, L), lambda i: (0, 0)),    # b2: VMEM-resident
        ],
        out_specs=pl.BlockSpec((TB, L), lambda i: (i, 0)),
        compiler_params=pltpu.CompilerParams(
            dimension_semantics=("parallel",),
        ),
    )(x_packed, w1_blk, b1_blk, w2_blk, b2_blk)

    out = out_packed.reshape(B_pad, C)
    return out[:B] if B_pad != B else out


def reference(x, w1, b1, w2, b2):
    h = jnp.maximum(x @ w1 + b1, 0.0)
    h = jnp.maximum(h @ w2 + b2, 0.0)
    return h + x


if __name__ == "__main__":
    angle_channel = 32

    key = jax.random.PRNGKey(0)
    kx, kw1, kb1, kw2, kb2 = jax.random.split(key, 5)

    # Deterministic "Linear" parameters stored as [C_in, C_out] (= W^T of PyTorch's [out, in]).
    bound = 1.0 / (angle_channel ** 0.5)
    w1 = jax.random.uniform(kw1, (angle_channel, angle_channel), jnp.float32, -bound, bound)
    b1 = jax.random.uniform(kb1, (angle_channel,), jnp.float32, -bound, bound)
    w2 = jax.random.uniform(kw2, (angle_channel, angle_channel), jnp.float32, -bound, bound)
    b2 = jax.random.uniform(kb2, (angle_channel,), jnp.float32, -bound, bound)

    # Case 1: small batch, multiple of the packing factor (no padding at all).
    batch = 20
    x = jax.random.normal(kx, (batch, angle_channel), dtype=jnp.float32)
    out = jax.block_until_ready(basic_block_1d(x, w1, b1, w2, b2))
    ref = reference(x, w1, b1, w2, b2)
    assert out.shape == x.shape and out.dtype == x.dtype
    assert jnp.allclose(out, ref, atol=1e-5, rtol=1e-5)

    # Case 2: batch not a multiple of 4 (exercises the tiny pack-padding path).
    batch2 = 19
    x2 = jax.random.normal(kx, (batch2, angle_channel), dtype=jnp.float32)
    out2 = jax.block_until_ready(basic_block_1d(x2, w1, b1, w2, b2))
    ref2 = reference(x2, w1, b1, w2, b2)
    assert out2.shape == x2.shape and out2.dtype == x2.dtype
    assert jnp.allclose(out2, ref2, atol=1e-5, rtol=1e-5)

    # Case 3: larger batch with a small tile cap -> multi-step grid with a
    # partial trailing block (exercises the tiled + resident-weights path).
    batch3 = 1200
    x3 = jax.random.normal(kx, (batch3, angle_channel), dtype=jnp.float32)
    out3 = jax.block_until_ready(basic_block_1d(x3, w1, b1, w2, b2, max_block_rows=128))
    ref3 = reference(x3, w1, b1, w2, b2)
    assert out3.shape == x3.shape and out3.dtype == x3.dtype
    assert jnp.allclose(out3, ref3, atol=1e-5, rtol=1e-5)

    print("KERNEL_OK")
</pallas_src>

<mosaic_0001>
module attributes {stable_mosaic.version = 11 : i64} {
  func.func @basic_block_1d_kernel(%arg0: i32, %arg1: memref<5x128xf32, #tpu.memory_space<vmem>>, %arg2: memref<128x128xf32, #tpu.memory_space<vmem>>, %arg3: memref<1x128xf32, #tpu.memory_space<vmem>>, %arg4: memref<128x128xf32, #tpu.memory_space<vmem>>, %arg5: memref<1x128xf32, #tpu.memory_space<vmem>>, %arg6: memref<5x128xf32, #tpu.memory_space<vmem>>) attributes {dimension_semantics = [#tpu.dimension_semantics<parallel>], iteration_bounds = array<i64: 1>, scalar_prefetch = 0 : i64, scratch_operands = 0 : i64, tpu.core_type = #tpu.core_type<tc>, window_params = [{transform_indices = @transform_0, window_bounds = array<i64: 5, 128>}, {pipeline_mode = #tpu.pipeline_mode<synchronous>, transform_indices = @transform_1, window_bounds = array<i64: 128, 128>}, {pipeline_mode = #tpu.pipeline_mode<synchronous>, transform_indices = @transform_2, window_bounds = array<i64: 1, 128>}, {pipeline_mode = #tpu.pipeline_mode<synchronous>, transform_indices = @transform_3, window_bounds = array<i64: 128, 128>}, {pipeline_mode = #tpu.pipeline_mode<synchronous>, transform_indices = @transform_4, window_bounds = array<i64: 1, 128>}, {transform_indices = @transform_5, window_bounds = array<i64: 5, 128>}]} {
    %c0 = arith.constant 0 : index
    %c0_0 = arith.constant 0 : index
    %0 = vector.load %arg1[%c0, %c0_0] : memref<5x128xf32, #tpu.memory_space<vmem>>, vector<5x128xf32>
    %c0_1 = arith.constant 0 : index
    %c0_2 = arith.constant 0 : index
    %1 = vector.load %arg2[%c0_1, %c0_2] : memref<128x128xf32, #tpu.memory_space<vmem>>, vector<128x128xf32>
    %cst = arith.constant dense<0.000000e+00> : vector<5x128xf32>
    %2 = tpu.matmul %0, %1, %cst {dimension_numbers = #tpu.dot_dimension_numbers<[1], [0], [0], [1], [0, 0, 1, 1], [], []>} : vector<5x128xf32>, vector<128x128xf32>, vector<5x128xf32> -> vector<5x128xf32>
    %c0_3 = arith.constant 0 : index
    %c0_4 = arith.constant 0 : index
    %3 = vector.load %arg3[%c0_3, %c0_4] : memref<1x128xf32, #tpu.memory_space<vmem>>, vector<1x128xf32>
    %4 = vector.broadcast %3 : vector<1x128xf32> to vector<5x128xf32>
    %5 = arith.addf %2, %4 : vector<5x128xf32>
    %cst_5 = arith.constant 0.000000e+00 : f32
    %6 = vector.broadcast %cst_5 : f32 to vector<5x128xf32>
    %7 = arith.maximumf %5, %6 : vector<5x128xf32>
    %c0_6 = arith.constant 0 : index
    %c0_7 = arith.constant 0 : index
    %8 = vector.load %arg4[%c0_6, %c0_7] : memref<128x128xf32, #tpu.memory_space<vmem>>, vector<128x128xf32>
    %cst_8 = arith.constant dense<0.000000e+00> : vector<5x128xf32>
    %9 = tpu.matmul %7, %8, %cst_8 {dimension_numbers = #tpu.dot_dimension_numbers<[1], [0], [0], [1], [0, 0, 1, 1], [], []>} : vector<5x128xf32>, vector<128x128xf32>, vector<5x128xf32> -> vector<5x128xf32>
    %c0_9 = arith.constant 0 : index
    %c0_10 = arith.constant 0 : index
    %10 = vector.load %arg5[%c0_9, %c0_10] : memref<1x128xf32, #tpu.memory_space<vmem>>, vector<1x128xf32>
    %11 = vector.broadcast %10 : vector<1x128xf32> to vector<5x128xf32>
    %12 = arith.addf %9, %11 : vector<5x128xf32>
    %cst_11 = arith.constant 0.000000e+00 : f32
    %13 = vector.broadcast %cst_11 : f32 to vector<5x128xf32>
    %14 = arith.maximumf %12, %13 : vector<5x128xf32>
    %15 = arith.addf %14, %0 : vector<5x128xf32>
    %c0_12 = arith.constant 0 : index
    %c0_13 = arith.constant 0 : index
    %16 = vector.load %arg6[%c0_12, %c0_13] : memref<5x128xf32, #tpu.memory_space<vmem>>, vector<5x128xf32>
    tpu.vector_store %arg6[%c0_12, %c0_13], %15 {strides = array<i32>} : memref<5x128xf32, #tpu.memory_space<vmem>>, vector<5x128xf32>,
    return
  }
  func.func @transform_0(%arg0: i32) -> (i32, i32) {
    %c0_i32 = arith.constant 0 : i32
    %c0_i32_0 = arith.constant 0 : i32
    return %arg0, %c0_i32 : i32, i32
  }
  func.func @transform_1(%arg0: i32) -> (i32, i32) {
    %c0_i32 = arith.constant 0 : i32
    %c0_i32_0 = arith.constant 0 : i32
    %c0_i32_1 = arith.constant 0 : i32
    return %c0_i32, %c0_i32_0 : i32, i32
  }
  func.func @transform_2(%arg0: i32) -> (i32, i32) {
    %c0_i32 = arith.constant 0 : i32
    %c0_i32_0 = arith.constant 0 : i32
    %c0_i32_1 = arith.constant 0 : i32
    return %c0_i32, %c0_i32_0 : i32, i32
  }
  func.func @transform_3(%arg0: i32) -> (i32, i32) {
    %c0_i32 = arith.constant 0 : i32
    %c0_i32_0 = arith.constant 0 : i32
    %c0_i32_1 = arith.constant 0 : i32
    return %c0_i32, %c0_i32_0 : i32, i32
  }
  func.func @transform_4(%arg0: i32) -> (i32, i32) {
    %c0_i32 = arith.constant 0 : i32
    %c0_i32_0 = arith.constant 0 : i32
    %c0_i32_1 = arith.constant 0 : i32
    return %c0_i32, %c0_i32_0 : i32, i32
  }
  func.func @transform_5(%arg0: i32) -> (i32, i32) {
    %c0_i32 = arith.constant 0 : i32
    %c0_i32_0 = arith.constant 0 : i32
    return %arg0, %c0_i32 : i32, i32
  }
}

</mosaic_0001>

<bundles_post_ra>
// kernel: tile.13
= control target key start
LH: loop header
LB: loop body
LE: loop exit
PB: predicated region body
PF: predicated region fallthrough
CT: control target
= control target key end

     0   :  { %s22_s0 = inlined_call_operand.vmem [shape: f32[32], index: 0, kind: input, shape index: {}]   ;;  %s23_s1 = inlined_call_operand.vmem [shape: f32[4,32], index: 1, kind: output, shape index: {}]  }
   0x1   :  { %v4_v0 = vld [vmem:[%s22_s0] ss:$0 sm:$0xff] }
   0x2   :  { %5 = vst [vmem:[%s23_s1] sm:$0xf] %v4_v0 }

// kernel: tile.14
= control target key start
LH: loop header
LB: loop body
LE: loop exit
PB: predicated region body
PF: predicated region fallthrough
CT: control target
= control target key end

     0   :  { %s37_s8 = smov 32   ;;  %s38_s9 = smov 64   ;;  %vm7_vm0 = vcmask 261120   ;;  %vm13_vm1 = vcmask 1048320   ;;  %vm19_vm2 = vcmask 785920   ;;  %vm25_vm3 = vcmask 523520   ;;  %s55_s0 = inlined_call_operand.vmem [shape: f32[4,32], index: 0, kind: input, shape index: {}]   ;;  %s56_s1 = inlined_call_operand.vmem [shape: f32[1,128], index: 1, kind: output, shape index: {}]  }
   0x1   :  { %v4_v0 = vld [vmem:[%s55_s0] sm:$0xf]  ;;  %s36_s0 = smov 96  }
   0x2   :  { %5 = vst [vmem:[#allocation1] sm:$0xf] %v4_v0 }
   0x9   :  { %v10_v1 = vld [vmem:[#allocation1 + $0x3] sm:$0x1]   ;;  %v22_v2 = vld [vmem:[#allocation1 + $0x1] sm:$0x1]   ;;  %v16_v3 = vld [vmem:[#allocation1 + $0x2] sm:$0x1]  }
   0xa   :  { %11 = vrot.lane.b32.xlu0 %v10_v1, %s36_s0  ;;  %23 = vrot.lane.b32.xlu1 %v22_v2, %s37_s8  ;;  %v6_v4 = vld [vmem:[#allocation1] sm:$0x1]  }
   0xb   :  { %8 = vst.msk [vmem:[#allocation0] sm:$0x1] %vm7_vm0, %v6_v4  }
  0x12   :  { %17 = vrot.lane.b32.xlu0 %v16_v3, %s38_s9 }
  0x7c   :  { %v12_v5 = vpop.permute.xlu0 %11   ;;  %v24_v6 = vpop.permute.xlu1 %23  }
  0x7d   :  { %14 = vst.msk [vmem:[#allocation0] sm:$0x1] %vm13_vm1, %v12_v5  }
  0x84   :  { %v18_v7 = vpop.permute.xlu0 %17  }
  0x85   :  { %20 = vst.msk [vmem:[#allocation0] sm:$0x1] %vm19_vm2, %v18_v7  }
  0x86   :  { %26 = vst.msk [vmem:[#allocation0] sm:$0x1] %vm25_vm3, %v24_v6  }
  0x8d   :  { %v29_v8 = vld [vmem:[#allocation0] sm:$0x1] }
  0x8e   :  { %32 = vst [vmem:[%s56_s1] sm:$0x1] %v29_v8 }

// kernel: basic_block_1d.1
= control target key start
LH: loop header
LB: loop body
LE: loop exit
PB: predicated region body
PF: predicated region fallthrough
CT: control target
= control target key end

     0   :  { %s249_s1 = inlined_call_operand.vmem [shape: f32[128,128], index: 1, kind: input, shape index: {}]   ;;  %s250_s3 = inlined_call_operand.vmem [shape: f32[128,128], index: 3, kind: input, shape index: {}]   ;;  %s251_s2 = inlined_call_operand.vmem [shape: f32[1,128], index: 2, kind: input, shape index: {}]   ;;  %s252_s0 = inlined_call_operand.vmem [shape: f32[5,128], index: 0, kind: input, shape index: {}]   ;;  %s253_s4 = inlined_call_operand.vmem [shape: f32[1,128], index: 4, kind: input, shape index: {}]   ;;  %s254_s5 = inlined_call_operand.vmem [shape: f32[5,128], index: 5, kind: output, shape index: {}]  }
   0x1   :  { %v36_v0 = vld [vmem:[%s249_s1 + $0x78] sm:$0xff]  ;;  %v35_v1 = vld [vmem:[%s249_s1 + $0x70] sm:$0xff]  ;;  %v34_v2 = vld [vmem:[%s249_s1 + $0x68] sm:$0xff] }
   0x2   :  { %41 = vmatpush.msra.mxu0 %v36_v0  ;;  %v33_v3 = vld [vmem:[%s249_s1 + $0x60] sm:$0xff]  ;;  %v77_v4 = vld [vmem:[%s250_s3 + $0x78] sm:$0xff]  ;;  %v76_v6 = vld [vmem:[%s250_s3 + $0x70] sm:$0xff] }
   0x3   :  { %v32_v5 = vld [vmem:[%s249_s1 + $0x58] sm:$0xff]  ;;  %82 = vmatpush.msra.mxu1 %v77_v4  ;;  %v75_v7 = vld [vmem:[%s250_s3 + $0x68] sm:$0xff]  ;;  %v31_v8 = vld [vmem:[%s249_s1 + $0x50] sm:$0xff] }
   0x4   :  { %42 = vmatpush.msra.mxu0 %v35_v1  ;;  %v74_v9 = vld [vmem:[%s250_s3 + $0x60] sm:$0xff]  ;;  %v30_v10 = vld [vmem:[%s249_s1 + $0x48] sm:$0xff]  ;;  %v73_v11 = vld [vmem:[%s250_s3 + $0x58] sm:$0xff] }
   0x5   :  { %83 = vmatpush.msra.mxu1 %v76_v6  ;;  %v29_v12 = vld [vmem:[%s249_s1 + $0x40] sm:$0xff]  ;;  %v72_v13 = vld [vmem:[%s250_s3 + $0x50] sm:$0xff]  ;;  %v28_v14 = vld [vmem:[%s249_s1 + $0x38] sm:$0xff] }
   0x6   :  { %43 = vmatpush.msra.mxu0 %v34_v2  ;;  %v71_v15 = vld [vmem:[%s250_s3 + $0x48] sm:$0xff]  ;;  %v27_v16 = vld [vmem:[%s249_s1 + $0x30] sm:$0xff]  ;;  %v70_v17 = vld [vmem:[%s250_s3 + $0x40] sm:$0xff] }
   0x7   :  { %84 = vmatpush.msra.mxu1 %v75_v7  ;;  %v26_v18 = vld [vmem:[%s249_s1 + $0x28] sm:$0xff]  ;;  %v69_v19 = vld [vmem:[%s250_s3 + $0x38] sm:$0xff]  ;;  %v25_v20 = vld [vmem:[%s249_s1 + $0x20] sm:$0xff] }
   0x8   :  { %44 = vmatpush.msra.mxu0 %v33_v3  ;;  %v68_v21 = vld [vmem:[%s250_s3 + $0x30] sm:$0xff]  ;;  %v24_v22 = vld [vmem:[%s249_s1 + $0x18] sm:$0xff]  ;;  %v67_v23 = vld [vmem:[%s250_s3 + $0x28] sm:$0xff] }
   0x9   :  { %85 = vmatpush.msra.mxu1 %v74_v9  ;;  %v23_v24 = vld [vmem:[%s249_s1 + $0x10] sm:$0xff]  ;;  %v66_v25 = vld [vmem:[%s250_s3 + $0x20] sm:$0xff]  ;;  %v22_v26 = vld [vmem:[%s249_s1 + $0x8] sm:$0xff] }
   0xa   :  { %45 = vmatpush.msra.mxu0 %v32_v5  ;;  %v65_v27 = vld [vmem:[%s250_s3 + $0x18] sm:$0xff]  ;;  %v21_v28 = vld [vmem:[%s249_s1] sm:$0xff]  ;;  %v64_v30 = vld [vmem:[%s250_s3 + $0x10] sm:$0xff] }
   0xb   :  { %86 = vmatpush.msra.mxu1 %v73_v11  ;;  %v20_v29 = vld [vmem:[%s252_s0] sm:$0x1f]  ;;  %v63_v31 = vld [vmem:[%s250_s3 + $0x8] sm:$0xff] }
   0xc   :  { %46 = vmatpush.msra.mxu0 %v31_v8  ;;  %v62_v32 = vld [vmem:[%s250_s3] sm:$0xff] }
   0xd   :  { %87 = vmatpush.msra.mxu1 %v72_v13  ;;  %v109_v33 = vld [vmem:[%s251_s2] ss:$0 sm:$0xff] }
   0xe   :  { %47 = vmatpush.msra.mxu0 %v30_v10  ;;  %v110_v37 = vld [vmem:[%s253_s4] ss:$0 sm:$0xff] }
   0xf   :  { %88 = vmatpush.msra.mxu1 %v71_v15 }
  0x10   :  { %48 = vmatpush.msra.mxu0 %v29_v12 }
  0x11   :  { %89 = vmatpush.msra.mxu1 %v70_v17 }
  0x12   :  { %49 = vmatpush.msra.mxu0 %v28_v14 }
  0x13   :  { %90 = vmatpush.msra.mxu1 %v69_v19 }
  0x14   :  { %50 = vmatpush.msra.mxu0 %v27_v16 }
  0x15   :  { %91 = vmatpush.msra.mxu1 %v68_v21 }
  0x16   :  { %51 = vmatpush.msra.mxu0 %v26_v18 }
  0x17   :  { %92 = vmatpush.msra.mxu1 %v67_v23 }
  0x18   :  { %52 = vmatpush.msra.mxu0 %v25_v20 }
  0x19   :  { %93 = vmatpush.msra.mxu1 %v66_v25 }
  0x1a   :  { %53 = vmatpush.msra.mxu0 %v24_v22 }
  0x1b   :  { %94 = vmatpush.msra.mxu1 %v65_v27 }
  0x1c   :  { %54 = vmatpush.msra.mxu0 %v23_v24 }
  0x1d   :  { %95 = vmatpush.msra.mxu1 %v64_v30 }
  0x1e   :  { %55 = vmatpush.msra.mxu0 %v22_v26 }
  0x1f   :  { %96 = vmatpush.msra.mxu1 %v63_v31 }
  0x20   :  { %56 = vmatpush.msra.mxu0 %v21_v28 }
  0x21   :  { %57 = vmatmul.f32.vlgmr.msra.gmra.mxu0 %v20_v29  ;;  %97 = vmatpush.msra.mxu1 %v62_v32 }
  0x9e   :  { %v58_v34 = vpop.f32.mrf.mxu0 }
  0x9f   :  { %v59_v35 = vadd.f32 %v109_v33, %v58_v34 }
  0xa1   :  { %v61_v36 = vmax.f32 %v59_v35, 0.0 }
  0xa3   :  { %98 = vmatmul.f32.vlgmr.msra.gmra.mxu1 %v61_v36 }
 0x120   :  { %v99_v38 = vpop.f32.mrf.mxu1 }
 0x121   :  { %v100_v39 = vadd.f32 %v110_v37, %v99_v38 }
 0x123   :  { %v102_v40 = vmax.f32 %v100_v39, 0.0 }
 0x125   :  { %v103_v41 = vadd.f32 %v102_v40, %v20_v29 }
 0x127   :  { %104 = vst [vmem:[%s254_s5] sm:$0x1f] %v103_v41 }

</bundles_post_ra>
